<compile_context>
chip_gen: v7x
topology: tpu7x:2x2x1
jax: 0.10.0
libtpu: 0.0.40
codegen_flags: <defaults>
</compile_context>

<pallas_src>
import math

import jax
import jax.numpy as jnp
from jax.experimental import pallas as pl
from jax.experimental.pallas import tpu as pltpu

STATE_SIZE = 8       # robot-state input features
ACTION_SIZE = 2      # output[0] -> linear vel, output[1] -> angular vel
HIDDEN = 128
OUT_ROWS = 16        # action rows padded to one full bf16 sublane tile
P_COLS = 8           # packed bias/epilogue table width (cols 0..4 used)
B_LANE = 128         # minimum lane-dense batch padding
B_TILE = 256         # batch lanes per grid step on the large-batch path

_VMEM = pl.BlockSpec(memory_space=pltpu.MemorySpace.VMEM)


def actor_kernel(x_ref, w1t_ref, w23_ref, p_ref, out_ref):
    """Feature-major 3-layer MLP: x (S, Bt) f32 -> out (OUT_ROWS, Bt) f32.

    out row 0 = (tanh(l3_0)+1)/20, row 1 = tanh(l3_1)/2, rows 2.. are exactly 0.
    """
    x = x_ref[...]                                   # (S, Bt) f32

    # Packed bias / epilogue table (pure data, nothing rebuilt per trace).
    b1 = p_ref[:, 0:1]                               # (H, 1)
    b2 = p_ref[:, 1:2]                               # (H, 1)
    b3 = p_ref[0:OUT_ROWS, 2:3]                      # (OUT_ROWS, 1)
    scale = p_ref[0:OUT_ROWS, 3:4]                   # epilogue scale
    offset = p_ref[0:OUT_ROWS, 4:5]                  # epilogue offset

    # Layer 1 in f32: K = STATE_SIZE = 8, bf16 buys no MXU time here and f32
    # keeps the 2-output policy head tight.
    h1 = jnp.dot(w1t_ref[...], x, preferred_element_type=jnp.float32) + b1
    h1 = jnp.maximum(h1, 0.0)                        # (H, Bt) f32

    # Layers 2/3: bf16 operands into the MXU, f32 accumulation.
    w2t = w23_ref[0:HIDDEN, :]                       # (H, H)        bf16
    w3t = w23_ref[HIDDEN:HIDDEN + OUT_ROWS, :]       # (OUT_ROWS, H) bf16
    h2 = jnp.dot(w2t, h1.astype(jnp.bfloat16),
                 preferred_element_type=jnp.float32) + b2
    h2 = jnp.maximum(h2, 0.0)                        # (H, Bt) f32
    h3 = jnp.dot(w3t, h2.astype(jnp.bfloat16),
                 preferred_element_type=jnp.float32) + b3

    # Fused epilogue (f32 elementwise; padded rows stay exactly 0).
    out_ref[...] = jnp.tanh(h3) * scale + offset


def _round_up(x, m):
    return (x + m - 1) // m * m


def _cost(b_pad):
    flops = 2 * b_pad * (STATE_SIZE * HIDDEN + HIDDEN * HIDDEN + HIDDEN * OUT_ROWS)
    trans = b_pad * OUT_ROWS
    weight_bytes = (HIDDEN * STATE_SIZE * 4            # w1t f32
                    + (HIDDEN + OUT_ROWS) * HIDDEN * 2  # w23 bf16
                    + HIDDEN * P_COLS * 4)              # bias/epilogue table f32
    bytes_accessed = weight_bytes + STATE_SIZE * b_pad * 4 + OUT_ROWS * b_pad * 4
    return pl.CostEstimate(flops=flops, transcendentals=trans,
                           bytes_accessed=bytes_accessed)


def actor_forward_batch(states, params):
    """states: (B, state_size) f32. Returns (lin_out, ang_out), each shape (B,)."""
    w1t, w23, p = params
    b = states.shape[0]

    if b <= B_TILE:
        b_pad = _round_up(max(b, 1), B_LANE)
        n_tiles = 1
        tile = b_pad
    else:
        b_pad = _round_up(b, B_TILE)
        n_tiles = b_pad // B_TILE
        tile = B_TILE

    # Feature-major, lane-dense input: batch on the lane axis, zero-padded.
    x_t = jnp.zeros((STATE_SIZE, b_pad), jnp.float32)
    x_t = x_t.at[:, :b].set(states.astype(jnp.float32).T)

    out_shape = jax.ShapeDtypeStruct((OUT_ROWS, b_pad), jnp.float32)

    if n_tiles == 1:
        # Small-batch / per-step path: gridless, whole-array VMEM blocks.
        out = pl.pallas_call(
            actor_kernel,
            out_shape=out_shape,
            in_specs=[_VMEM] * 4,
            out_specs=_VMEM,
            cost_estimate=_cost(b_pad),
        )(x_t, w1t, w23, p)
    else:
        # Rollout/throughput path: parallel grid over batch tiles (both TCs on
        # v7x); parameter BlockSpecs use constant index_maps so weights are
        # DMA'd once and stay VMEM-resident across all grid steps.
        out = pl.pallas_call(
            actor_kernel,
            out_shape=out_shape,
            grid=(n_tiles,),
            in_specs=[
                pl.BlockSpec((STATE_SIZE, tile), lambda i: (0, i)),
                pl.BlockSpec((HIDDEN, STATE_SIZE), lambda i: (0, 0)),
                pl.BlockSpec((HIDDEN + OUT_ROWS, HIDDEN), lambda i: (0, 0)),
                pl.BlockSpec((HIDDEN, P_COLS), lambda i: (0, 0)),
            ],
            out_specs=pl.BlockSpec((OUT_ROWS, tile), lambda i: (0, i)),
            compiler_params=pltpu.CompilerParams(
                dimension_semantics=("parallel",)),
            cost_estimate=_cost(b_pad),
        )(x_t, w1t, w23, p)

    return out[0, :b], out[1, :b]


def actor_forward(state, params):
    """Single-state forward matching the PyTorch module: returns two (1,) arrays."""
    lin, ang = actor_forward_batch(state.reshape(1, -1), params)
    return lin, ang


def pack_actor_params(w1, b1, w2, b2, w3, b3):
    """Pack nn.Linear-style params into the kernel's 3-operand layout."""
    w1t = w1.T.astype(jnp.float32)                               # (H, S) f32
    w3t = jnp.zeros((OUT_ROWS, HIDDEN), jnp.float32).at[:w3.shape[1], :].set(w3.T)
    w23 = jnp.concatenate([w2.T.astype(jnp.bfloat16),
                           w3t.astype(jnp.bfloat16)], axis=0)    # (H+OUT_ROWS, H)

    p = jnp.zeros((HIDDEN, P_COLS), jnp.float32)
    p = p.at[:, 0].set(b1)                                       # bias 1
    p = p.at[:, 1].set(b2)                                       # bias 2
    p = p.at[:b3.shape[0], 2].set(b3)                            # bias 3 (padded)
    p = p.at[0, 3].set(1.0 / 20.0)                               # lin scale
    p = p.at[1, 3].set(0.5)                                      # ang scale
    p = p.at[0, 4].set(1.0 / 20.0)                               # lin offset
    return (w1t, w23, p)


def init_actor_params(key, state_size, action_size):
    """Deterministic init mimicking nn.Linear (uniform +/- 1/sqrt(fan_in))."""
    def linear(k, fan_in, fan_out):
        kw, kb = jax.random.split(k)
        bound = 1.0 / math.sqrt(fan_in)
        w = jax.random.uniform(kw, (fan_in, fan_out), jnp.float32, -bound, bound)
        b = jax.random.uniform(kb, (fan_out,), jnp.float32, -bound, bound)
        return w, b

    k1, k2, k3 = jax.random.split(key, 3)
    w1, b1 = linear(k1, state_size, HIDDEN)
    w2, b2 = linear(k2, HIDDEN, HIDDEN)
    w3, b3 = linear(k3, HIDDEN, action_size)
    return pack_actor_params(w1, b1, w2, b2, w3, b3)


def actor_reference(states, params):
    """Pure-JAX f32 reference of the PyTorch forward (batched), for validation."""
    w1t, w23, p = params
    hi = jax.lax.Precision.HIGHEST
    w1 = w1t.astype(jnp.float32).T                     # (S, H)
    w2 = w23[:HIDDEN].astype(jnp.float32).T            # (H, H)
    w3t = w23[HIDDEN:].astype(jnp.float32)             # (OUT_ROWS, H)
    b1, b2, b3 = p[:, 0], p[:, 1], p[:OUT_ROWS, 2]

    x = states.astype(jnp.float32)
    h = jnp.maximum(jnp.dot(x, w1, precision=hi) + b1, 0.0)
    h = jnp.maximum(jnp.dot(h, w2, precision=hi) + b2, 0.0)
    out = jnp.tanh(jnp.dot(h, w3t.T, precision=hi) + b3)   # (B, OUT_ROWS)
    lin = (out[:, 0] + 1.0) / 20.0
    ang = out[:, 1] / 2.0
    return lin, ang


if __name__ == "__main__":
    key = jax.random.PRNGKey(0)
    k_params, k_state, k_batch, k_big = jax.random.split(key, 4)

    params = init_actor_params(k_params, STATE_SIZE, ACTION_SIZE)

    # --- single-state path (matches the torch module's forward semantics) ---
    state = jax.random.normal(k_state, (STATE_SIZE,), jnp.float32)
    lin_out, ang_out = jax.jit(actor_forward)(state, params)
    jax.block_until_ready((lin_out, ang_out))

    lin_ref, ang_ref = actor_reference(state.reshape(1, -1), params)
    assert lin_out.shape == (1,) and ang_out.shape == (1,)
    assert jnp.allclose(lin_out, lin_ref, atol=5e-3), (lin_out, lin_ref)
    assert jnp.allclose(ang_out, ang_ref, atol=5e-3), (ang_out, ang_ref)

    # --- small batched path (gridless, single VMEM block) ---
    states = jax.random.normal(k_batch, (8, STATE_SIZE), jnp.float32)
    lin_b, ang_b = jax.jit(actor_forward_batch)(states, params)
    jax.block_until_ready((lin_b, ang_b))

    lin_rb, ang_rb = actor_reference(states, params)
    assert lin_b.shape == (8,) and ang_b.shape == (8,)
    assert jnp.allclose(lin_b, lin_rb, atol=5e-3), (lin_b, lin_rb)
    assert jnp.allclose(ang_b, ang_rb, atol=5e-3), (ang_b, ang_rb)

    # --- rollout batch (grid path: parallel batch tiles, weights resident) ---
    states_big = jax.random.normal(k_big, (300, STATE_SIZE), jnp.float32)
    lin_g, ang_g = jax.jit(actor_forward_batch)(states_big, params)
    jax.block_until_ready((lin_g, ang_g))

    lin_rg, ang_rg = actor_reference(states_big, params)
    assert lin_g.shape == (300,) and ang_g.shape == (300,)
    assert jnp.allclose(lin_g, lin_rg, atol=5e-3), (lin_g, lin_rg)
    assert jnp.allclose(ang_g, ang_rg, atol=5e-3), (ang_g, ang_rg)

    print("KERNEL_OK")
</pallas_src>

<mosaic_0001>
module attributes {stable_mosaic.version = 11 : i64} {
  func.func @actor_kernel(%arg0: memref<8x128xf32, #tpu.memory_space<vmem>>, %arg1: memref<128x8xf32, #tpu.memory_space<vmem>>, %arg2: memref<144x128xbf16, #tpu.memory_space<vmem>>, %arg3: memref<128x8xf32, #tpu.memory_space<vmem>>, %arg4: memref<16x128xf32, #tpu.memory_space<vmem>>) attributes {dimension_semantics = [], scalar_prefetch = 0 : i64, scratch_operands = 0 : i64, tpu.core_type = #tpu.core_type<tc>} {
    %c0 = arith.constant 0 : index
    %c0_0 = arith.constant 0 : index
    %0 = vector.load %arg0[%c0, %c0_0] : memref<8x128xf32, #tpu.memory_space<vmem>>, vector<8x128xf32>
    %c0_1 = arith.constant 0 : index
    %c0_2 = arith.constant 0 : index
    %1 = vector.load %arg3[%c0_1, %c0_2] : memref<128x8xf32, #tpu.memory_space<vmem>>, vector<128x1xf32>
    %c0_3 = arith.constant 0 : index
    %c1 = arith.constant 1 : index
    %2 = vector.load %arg3[%c0_3, %c1] : memref<128x8xf32, #tpu.memory_space<vmem>>, vector<128x1xf32>
    %c0_4 = arith.constant 0 : index
    %c2 = arith.constant 2 : index
    %3 = vector.load %arg3[%c0_4, %c2] : memref<128x8xf32, #tpu.memory_space<vmem>>, vector<16x1xf32>
    %c0_5 = arith.constant 0 : index
    %c3 = arith.constant 3 : index
    %4 = vector.load %arg3[%c0_5, %c3] : memref<128x8xf32, #tpu.memory_space<vmem>>, vector<16x1xf32>
    %c0_6 = arith.constant 0 : index
    %c4 = arith.constant 4 : index
    %5 = vector.load %arg3[%c0_6, %c4] : memref<128x8xf32, #tpu.memory_space<vmem>>, vector<16x1xf32>
    %c0_7 = arith.constant 0 : index
    %c0_8 = arith.constant 0 : index
    %6 = vector.load %arg1[%c0_7, %c0_8] : memref<128x8xf32, #tpu.memory_space<vmem>>, vector<128x8xf32>
    %cst = arith.constant dense<0.000000e+00> : vector<128x128xf32>
    %7 = tpu.matmul %6, %0, %cst {dimension_numbers = #tpu.dot_dimension_numbers<[1], [0], [0], [1], [0, 0, 1, 1], [], []>} : vector<128x8xf32>, vector<8x128xf32>, vector<128x128xf32> -> vector<128x128xf32>
    %8 = vector.broadcast %1 : vector<128x1xf32> to vector<128x128xf32>
    %9 = arith.addf %7, %8 : vector<128x128xf32>
    %cst_9 = arith.constant 0.000000e+00 : f32
    %10 = vector.broadcast %cst_9 : f32 to vector<128x128xf32>
    %11 = arith.maximumf %9, %10 : vector<128x128xf32>
    %c0_10 = arith.constant 0 : index
    %c0_11 = arith.constant 0 : index
    %12 = vector.load %arg2[%c0_10, %c0_11] : memref<144x128xbf16, #tpu.memory_space<vmem>>, vector<128x128xbf16>
    %c128 = arith.constant 128 : index
    %c0_12 = arith.constant 0 : index
    %13 = vector.load %arg2[%c128, %c0_12] : memref<144x128xbf16, #tpu.memory_space<vmem>>, vector<16x128xbf16>
    %14 = arith.truncf %11 : vector<128x128xf32> to vector<128x128xbf16>
    %cst_13 = arith.constant dense<0.000000e+00> : vector<128x128xf32>
    %15 = tpu.matmul %12, %14, %cst_13 {dimension_numbers = #tpu.dot_dimension_numbers<[1], [0], [0], [1], [0, 0, 1, 1], [], []>} : vector<128x128xbf16>, vector<128x128xbf16>, vector<128x128xf32> -> vector<128x128xf32>
    %16 = vector.broadcast %2 : vector<128x1xf32> to vector<128x128xf32>
    %17 = arith.addf %15, %16 : vector<128x128xf32>
    %cst_14 = arith.constant 0.000000e+00 : f32
    %18 = vector.broadcast %cst_14 : f32 to vector<128x128xf32>
    %19 = arith.maximumf %17, %18 : vector<128x128xf32>
    %20 = arith.truncf %19 : vector<128x128xf32> to vector<128x128xbf16>
    %cst_15 = arith.constant dense<0.000000e+00> : vector<16x128xf32>
    %21 = tpu.matmul %13, %20, %cst_15 {dimension_numbers = #tpu.dot_dimension_numbers<[1], [0], [0], [1], [0, 0, 1, 1], [], []>} : vector<16x128xbf16>, vector<128x128xbf16>, vector<16x128xf32> -> vector<16x128xf32>
    %22 = vector.broadcast %3 : vector<16x1xf32> to vector<16x128xf32>
    %23 = arith.addf %21, %22 : vector<16x128xf32>
    %24 = math.tanh %23 : vector<16x128xf32>
    %25 = vector.broadcast %4 : vector<16x1xf32> to vector<16x128xf32>
    %26 = arith.mulf %24, %25 : vector<16x128xf32>
    %27 = vector.broadcast %5 : vector<16x1xf32> to vector<16x128xf32>
    %28 = arith.addf %26, %27 : vector<16x128xf32>
    %c0_16 = arith.constant 0 : index
    %c0_17 = arith.constant 0 : index
    %29 = vector.load %arg4[%c0_16, %c0_17] : memref<16x128xf32, #tpu.memory_space<vmem>>, vector<16x128xf32>
    tpu.vector_store %arg4[%c0_16, %c0_17], %28 {strides = array<i32>} : memref<16x128xf32, #tpu.memory_space<vmem>>, vector<16x128xf32>,
    return
  }
}

</mosaic_0001>

<bundles_post_ra>
// kernel: actor_forward.1
= control target key start
LH: loop header
LB: loop body
LE: loop exit
PB: predicated region body
PF: predicated region fallthrough
CT: control target
= control target key end

     0   :  { %vm131_vm0 = vcmask 64512   ;;  %v857_v3 = vmov 0   ;;  %v858_v35 = vmov 1   ;;  %vm860_vm1 = vmmov 0   ;;  %s1060_s0 = inlined_call_operand.vmem [shape: f32[8,128], index: 0, kind: input, shape index: {}]   ;;  %s1061_s1 = inlined_call_operand.vmem [shape: f32[128,8], index: 1, kind: input, shape index: {}]   ;;  %s1062_s3 = inlined_call_operand.vmem [shape: f32[128,8], index: 3, kind: input, shape index: {}]   ;;  %s1063_s2 = inlined_call_operand.vmem [shape: bf16[144,128], index: 2, kind: input, shape index: {}]   ;;  %s1064_s4 = inlined_call_operand.vmem [shape: f32[16,128], index: 4, kind: output, shape index: {}]  }
   0x1   :  { %v18_v0 = vld [vmem:[%s1060_s0] sm:$0xff]  ;;  %v36_v2 = vld [vmem:[%s1061_s1 + $0x8] sm:$0xff]  ;;  %835 = vset.pattern.permute.xlu0 %v857_v3  ;;  %836 = vset.pattern.permute.xlu1 %v857_v3  ;;  %v37_v4 = vld [vmem:[%s1061_s1 + $0x10] sm:$0xff] }
   0x2   :  { %v35_v1 = vld [vmem:[%s1061_s1] sm:$0xff]  ;;  %750 = vmatprep.subr.mxu0 %v18_v0  ;;  %v38_v5 = vld [vmem:[%s1061_s1 + $0x18] sm:$0xff]  ;;  %v21_v8 = vld [vmem:[%s1062_s3 + $0x10] sm:$0xff] }
   0x3   :  { %752 = vmatprep.mubr.msk.f32.mxu0 %vm131_vm0, %v35_v1  ;;  %751 = vmatpush3.msra.mxu0 %v18_v0  ;;  %v39_v6 = vld [vmem:[%s1061_s1 + $0x20] sm:$0xff]  ;;  %v923_v9 = vld [vmem:[%s1062_s3 + $0x8] sm:$0xff]  ;;  %v22_v11 = vld [vmem:[%s1062_s3 + $0x18] sm:$0xff] }
   0x4   :  { %753 = vmatmul.mubr.msk.f32.vlgmr.msra.gmra.mrb[0].mxu0 %vm131_vm0, %v36_v2  ;;  %v913_v7 = vld [vmem:[%s1062_s3] sm:$0xff]  ;;  %63 = vperm.xlu1 %836, %v21_v8   ;;  %v40_v10 = vld [vmem:[%s1061_s1 + $0x28] sm:$0xff]  ;;  %v41_v12 = vld [vmem:[%s1061_s1 + $0x30] sm:$0xff] }
   0x5   :  { %755 = vmatprep.mubr.msk.f32.mxu0 %vm131_vm0, %v37_v4  ;;  %53 = vperm.xlu0 %835, %v913_v7   ;;  %v23_v13 = vld [vmem:[%s1062_s3 + $0x20] sm:$0xff]  ;;  %v42_v14 = vld [vmem:[%s1061_s1 + $0x38] sm:$0xff]  ;;  %v24_v15 = vld [vmem:[%s1062_s3 + $0x28] sm:$0xff] }
   0x6   :  { %v43_v16 = vld [vmem:[%s1061_s1 + $0x40] sm:$0xff]  ;;  %v25_v17 = vld [vmem:[%s1062_s3 + $0x30] sm:$0xff]  ;;  %v44_v18 = vld [vmem:[%s1061_s1 + $0x48] sm:$0xff] }
   0x7   :  { %v26_v19 = vld [vmem:[%s1062_s3 + $0x38] sm:$0xff]  ;;  %v45_v20 = vld [vmem:[%s1061_s1 + $0x50] sm:$0xff]  ;;  %v27_v21 = vld [vmem:[%s1062_s3 + $0x40] sm:$0xff] }
   0x8   :  { %756 = vmatmul.mubr.msk.f32.gmra.mrb[2].mxu0 %vm131_vm0, %v38_v5  ;;  %68 = vperm.xlu1 %836, %v22_v11   ;;  %v46_v22 = vld [vmem:[%s1061_s1 + $0x58] sm:$0xff]  ;;  %v28_v23 = vld [vmem:[%s1062_s3 + $0x48] sm:$0xff]  ;;  %v47_v24 = vld [vmem:[%s1061_s1 + $0x60] sm:$0xff] }
   0x9   :  { %758 = vmatprep.mubr.msk.f32.mxu0 %vm131_vm0, %v39_v6  ;;  %58 = vperm.xlu0 %835, %v923_v9   ;;  %v29_v25 = vld [vmem:[%s1062_s3 + $0x50] sm:$0xff]  ;;  %v48_v26 = vld [vmem:[%s1061_s1 + $0x68] sm:$0xff]  ;;  %v30_v27 = vld [vmem:[%s1062_s3 + $0x58] sm:$0xff] }
   0xa   :  { %v49_v28 = vld [vmem:[%s1061_s1 + $0x70] sm:$0xff]  ;;  %v31_v29 = vld [vmem:[%s1062_s3 + $0x60] sm:$0xff]  ;;  %v50_v30 = vld [vmem:[%s1061_s1 + $0x78] sm:$0xff] }
   0xb   :  { %v32_v31 = vld [vmem:[%s1062_s3 + $0x68] sm:$0xff]  ;;  %v33_v32 = vld [vmem:[%s1062_s3 + $0x70] sm:$0xff]  ;;  %v34_v33 = vld [vmem:[%s1062_s3 + $0x78] sm:$0xff] }
   0xc   :  { %759 = vmatmul.mubr.msk.f32.gmra.mrb[4].mxu0 %vm131_vm0, %v40_v10  ;;  %78 = vperm.xlu1 %836, %v24_v15   ;;  %v844_v34 = vld [vmem:[%s1063_s2] sm:$0xff]  }
   0xd   :  { %761 = vmatprep.mubr.msk.f32.mxu0 %vm131_vm0, %v41_v12  ;;  %73 = vperm.xlu0 %835, %v23_v13  }
   0xe   :  { %792 = vmatprep.mubr.bf16.mxu1 %v844_v34 }
  0x10   :  { %762 = vmatmul.mubr.msk.f32.gmra.mrb[6].mxu0 %vm131_vm0, %v42_v14  ;;  %88 = vperm.xlu1 %836, %v26_v19  }
  0x11   :  { %764 = vmatprep.mubr.msk.f32.mxu0 %vm131_vm0, %v43_v16  ;;  %83 = vperm.xlu0 %835, %v25_v17  }
  0x14   :  { %765 = vmatmul.mubr.msk.f32.gmra.mrb[8].mxu0 %vm131_vm0, %v44_v18  ;;  %98 = vperm.xlu1 %836, %v28_v23  }
  0x15   :  { %767 = vmatprep.mubr.msk.f32.mxu0 %vm131_vm0, %v45_v20  ;;  %93 = vperm.xlu0 %835, %v27_v21  }
  0x18   :  { %768 = vmatmul.mubr.msk.f32.gmra.mrb[10].mxu0 %vm131_vm0, %v46_v22  ;;  %108 = vperm.xlu1 %836, %v30_v27  }
  0x19   :  { %770 = vmatprep.mubr.msk.f32.mxu0 %vm131_vm0, %v47_v24  ;;  %103 = vperm.xlu0 %835, %v29_v25  }
  0x1c   :  { %771 = vmatmul.mubr.msk.f32.gmra.mrb[12].mxu0 %vm131_vm0, %v48_v26  ;;  %118 = vperm.xlu1 %836, %v32_v31  }
  0x1d   :  { %773 = vmatprep.mubr.msk.f32.mxu0 %vm131_vm0, %v49_v28  ;;  %113 = vperm.xlu0 %835, %v31_v29  }
  0x20   :  { %774 = vmatmul.mubr.msk.f32.gmra.mrb[14].mxu0 %vm131_vm0, %v50_v30  ;;  %128 = vperm.xlu1 %836, %v34_v33  }
  0x21   :  { %123 = vperm.xlu0 %835, %v33_v32  }
  0x24   :  { %838 = vset.pattern.permute.xlu1 %v858_v35 }
  0x25   :  { %837 = vset.pattern.permute.xlu0 %v858_v35  ;;  %372 = vperm.xlu1 %838, %v923_v9  }
  0x26   :  { %368 = vperm.xlu0 %837, %v913_v7  }
  0x29   :  { %376 = vperm.xlu1 %838, %v21_v8  }
  0x2a   :  { %380 = vperm.xlu0 %837, %v22_v11  }
  0x2d   :  { %384 = vperm.xlu1 %838, %v23_v13  }
  0x2e   :  { %388 = vperm.xlu0 %837, %v24_v15  }
  0x31   :  { %392 = vperm.xlu1 %838, %v25_v17  }
  0x32   :  { %396 = vperm.xlu0 %837, %v26_v19  }
  0x35   :  { %400 = vperm.xlu1 %838, %v27_v21  }
  0x36   :  { %404 = vperm.xlu0 %837, %v28_v23  }
  0x39   :  { %408 = vperm.xlu1 %838, %v29_v25  }
  0x3a   :  { %412 = vperm.xlu0 %837, %v30_v27  }
  0x3d   :  { %416 = vperm.xlu1 %838, %v31_v29  }
  0x3e   :  { %420 = vperm.xlu0 %837, %v32_v31  }
  0x41   :  { %424 = vperm.xlu1 %838, %v33_v32  }
  0x42   :  { %428 = vperm.xlu0 %837, %v34_v33  }
  0x83   :  { %v64_v36 = vpop.permute.xlu1 %63 }
  0x84   :  { %v54_v37 = vpop.permute.xlu0 %53 }
  0x87   :  { %v69_v38 = vpop.permute.xlu1 %68 }
  0x88   :  { %v59_v39 = vpop.permute.xlu0 %58 }
  0x8b   :  { %v79_v40 = vpop.permute.xlu1 %78 }
  0x8c   :  { %v74_v41 = vpop.permute.xlu0 %73 }
  0x8f   :  { %v89_v47 = vpop.permute.xlu1 %88 }
  0x90   :  { %v84_v50 = vpop.permute.xlu0 %83 }
  0x93   :  { %v99_v60 = vpop.permute.xlu1 %98 }
  0x94   :  { %v94_v63 = vpop.permute.xlu0 %93 }
  0x97   :  { %v109_v10 = vpop.permute.xlu1 %108 }
  0x98   :  { %v104_v13 = vpop.permute.xlu0 %103 }
  0x9b   :  { %v119_v23 = vpop.permute.xlu1 %118 }
  0x9c   :  { %v114_v26 = vpop.permute.xlu0 %113 }
  0x9f   :  { %v129_v35 = vpop.permute.xlu1 %128 }
  0xd7   :  { %v754_v42 = vpop.f32.mrb[0].mxu0 }
  0xd8   :  { %v252_v43 = vadd.f32 %v754_v42, %v59_v39  ;;  %v246_v44 = vpop.f32.mrb[1].mxu0 }
  0xd9   :  { %v247_v45 = vadd.f32 %v246_v44, %v54_v37 }
  0xda   :  { %v326_v46 = vmax.f32 %v252_v43, 0.0 }
  0xdb   :  { %v325_v48 = vmax.f32 %v247_v45, 0.0  ;;  %v757_v49 = vpop.f32.mrb[2].mxu0 }
  0xdc   :  { %v262_v51 = vadd.f32 %v757_v49, %v69_v38  ;;  %v256_v52 = vpop.f32.mrb[3].mxu0  ;;  %v124_v38 = vpop.permute.xlu0 %123  ;;  %v848_v49 = vld [vmem:[%s1063_s2 + $0x20] sm:$0xff]  }
  0xdd   :  { %v257_v53 = vadd.f32 %v256_v52, %v64_v36  ;;  %v359_v54 = vpack.c.bf16 %v326_v46, %v325_v48  ;;  %v845_v46 = vld [vmem:[%s1063_s2 + $0x8] sm:$0xff]   ;;  %v847_v48 = vld [vmem:[%s1063_s2 + $0x18] sm:$0xff]  }
  0xde   :  { %v328_v55 = vmax.f32 %v262_v51, 0.0  ;;  %v850_v51 = vld [vmem:[%s1063_s2 + $0x30] sm:$0xff]   ;;  %v851_v52 = vld [vmem:[%s1063_s2 + $0x38] sm:$0xff]  }
  0xdf   :  { %v327_v56 = vmax.f32 %v257_v53, 0.0  ;;  %v760_v57 = vpop.f32.mrb[4].mxu0  ;;  %776 = vmatprep.subr.bf16.mxu1 %v359_v54  ;;  %v859_v53 = vmov 0.0  }
  0xe0   :  { %v272_v58 = vadd.f32 %v760_v57, %v79_v40  ;;  %v266_v59 = vpop.f32.mrb[5].mxu0  ;;  %777 = vmatpush3.bf16.msra.mxu1 %v359_v54  ;;  %808 = vmatprep.subr.bf16.mxu0 %v859_v53  ;;  %v861_v54 = vmov 2   ;;  %v373_v57 = vpop.permute.xlu1 %372 }
  0xe1   :  { %v360_v61 = vpack.c.bf16 %v328_v55, %v327_v56  ;;  %v267_v62 = vadd.f32 %v266_v59, %v74_v41  ;;  %824 = vmatprep.mubr.msk.bf16.mxu0 %vm860_vm1, %v859_v53  ;;  %839 = vset.pattern.permute.xlu1 %v861_v54  ;;  %v862_v55 = vmov 3   ;;  %v863_v56 = vmov 4  }
  0xe2   :  { %v330_v0 = vmax.f32 %v272_v58, 0.0  ;;  %840 = vset.pattern.permute.xlu0 %v861_v54  ;;  %601 = vperm.xlu1 %839, %v913_v7   ;;  %v369_v58 = vpop.permute.xlu0 %368 }
  0xe3   :  { %v329_v1 = vmax.f32 %v267_v62, 0.0  ;;  %v763_v2 = vpop.f32.mrb[6].mxu0  ;;  %778 = vmatprep.subr.bf16.mxu1 %v360_v61  ;;  %605 = vperm.xlu0 %840, %v923_v9  }
  0xe4   :  { %v282_v3 = vadd.f32 %v763_v2, %v89_v47  ;;  %v276_v4 = vpop.f32.mrb[7].mxu0  ;;  %779 = vmatpush3.bf16.msra.mxu1 %v360_v61  ;;  %v846_v47 = vld [vmem:[%s1063_s2 + $0x10] sm:$0xff]   ;;  %v377_v59 = vpop.permute.xlu1 %376 }
  0xe5   :  { %v361_v5 = vpack.c.bf16 %v330_v0, %v329_v1  ;;  %v277_v6 = vadd.f32 %v276_v4, %v84_v50  ;;  %v849_v50 = vld [vmem:[%s1063_s2 + $0x28] sm:$0xff]  }
  0xe6   :  { %v332_v8 = vmax.f32 %v282_v3, 0.0  ;;  %841 = vset.pattern.permute.xlu1 %v862_v55 }
  0xe7   :  { %v331_v11 = vmax.f32 %v277_v6, 0.0  ;;  %v766_v12 = vpop.f32.mrb[8].mxu0  ;;  %780 = vmatprep.subr.bf16.mxu1 %v361_v5  ;;  %842 = vset.pattern.permute.xlu0 %v863_v56 }
  0xe8   :  { %v292_v14 = vadd.f32 %v766_v12, %v99_v60  ;;  %v286_v15 = vpop.f32.mrb[9].mxu0  ;;  %781 = vmatpush3.bf16.msra.mxu1 %v361_v5  ;;  %658 = vperm.xlu1 %841, %v913_v7   ;;  %v381_v60 = vpop.permute.xlu0 %380 }
  0xe9   :  { %v362_v16 = vpack.c.bf16 %v332_v8, %v331_v11  ;;  %v287_v17 = vadd.f32 %v286_v15, %v94_v63  ;;  %668 = vperm.xlu0 %842, %v913_v7   ;;  %v385_v61 = vpop.permute.xlu1 %384 }
  0xea   :  { %v334_v18 = vmax.f32 %v292_v14, 0.0 }
  0xeb   :  { %v333_v19 = vmax.f32 %v287_v17, 0.0  ;;  %v769_v20 = vpop.f32.mrb[10].mxu0  ;;  %782 = vmatprep.subr.bf16.mxu1 %v362_v16 }
  0xec   :  { %v302_v21 = vadd.f32 %v769_v20, %v109_v10  ;;  %v296_v22 = vpop.f32.mrb[11].mxu0  ;;  %783 = vmatpush3.bf16.msra.mxu1 %v362_v16  ;;  %662 = vperm.xlu1 %841, %v923_v9   ;;  %v389_v62 = vpop.permute.xlu0 %388 }
  0xed   :  { %v363_v24 = vpack.c.bf16 %v334_v18, %v333_v19  ;;  %v297_v25 = vadd.f32 %v296_v22, %v104_v13  ;;  %v393_v63 = vpop.permute.xlu1 %392 }
  0xee   :  { %v336_v27 = vmax.f32 %v302_v21, 0.0 }
  0xef   :  { %v335_v28 = vmax.f32 %v297_v25, 0.0  ;;  %v772_v29 = vpop.f32.mrb[12].mxu0  ;;  %784 = vmatprep.subr.bf16.mxu1 %v363_v24 }
  0xf0   :  { %v312_v30 = vadd.f32 %v772_v29, %v119_v23  ;;  %v306_v31 = vpop.f32.mrb[13].mxu0  ;;  %785 = vmatpush3.bf16.msra.mxu1 %v363_v24  ;;  %843 = vset.pattern.permute.xlu1 %v863_v56  ;;  %v397_v3 = vpop.permute.xlu0 %396 }
  0xf1   :  { %v364_v32 = vpack.c.bf16 %v336_v27, %v335_v28  ;;  %v307_v33 = vadd.f32 %v306_v31, %v114_v26  ;;  %672 = vperm.xlu1 %843, %v923_v9   ;;  %v401_v12 = vpop.permute.xlu1 %400 }
  0xf2   :  { %v338_v34 = vmax.f32 %v312_v30, 0.0 }
  0xf3   :  { %v337_v36 = vmax.f32 %v307_v33, 0.0  ;;  %v775_v37 = vpop.f32.mrb[14].mxu0  ;;  %786 = vmatprep.subr.bf16.mxu1 %v364_v32 }
  0xf4   :  { %v322_v39 = vadd.f32 %v775_v37, %v129_v35  ;;  %v316_v40 = vpop.f32.mrb[15].mxu0  ;;  %787 = vmatpush3.bf16.msra.mxu1 %v364_v32  ;;  %v405_v15 = vpop.permute.xlu0 %404 }
  0xf5   :  { %v365_v41 = vpack.c.bf16 %v338_v34, %v337_v36  ;;  %v317_v42 = vadd.f32 %v316_v40, %v124_v38  ;;  %v409_v24 = vpop.permute.xlu1 %408 }
  0xf6   :  { %v340_v43 = vmax.f32 %v322_v39, 0.0 }
  0xf7   :  { %v339_v44 = vmax.f32 %v317_v42, 0.0  ;;  %788 = vmatprep.subr.bf16.mxu1 %v365_v41 }
  0xf8   :  { %789 = vmatpush3.bf16.msra.mxu1 %v365_v41  ;;  %v413_v28 = vpop.permute.xlu0 %412 }
  0xf9   :  { %v366_v45 = vpack.c.bf16 %v340_v43, %v339_v44  ;;  %v417_v36 = vpop.permute.xlu1 %416 }
  0xfb   :  { %790 = vmatprep.subr.bf16.mxu1 %v366_v45 }
  0xfc   :  { %791 = vmatpush3.bf16.msra.mxu1 %v366_v45  ;;  %v421_v41 = vpop.permute.xlu0 %420 }
  0xff   :  { %793 = vmatmul.mubr.bf16.vlgmr.msra.gmra.mrb[0].mxu1 %v845_v46 }
 0x100   :  { %796 = vmatprep.mubr.bf16.mxu1 %v846_v47  ;;  %v429_v54 = vpop.permute.xlu0 %428 }
 0x107   :  { %797 = vmatmul.mubr.bf16.gmra.mrb[4].mxu1 %v847_v48  ;;  %v425_v48 = vpop.permute.xlu1 %424 }
 0x108   :  { %800 = vmatprep.mubr.bf16.mxu1 %v848_v49 }
 0x10f   :  { %801 = vmatmul.mubr.bf16.gmra.mrb[8].mxu1 %v849_v50 }
 0x110   :  { %804 = vmatprep.mubr.bf16.mxu1 %v850_v51 }
 0x117   :  { %805 = vmatmul.mubr.bf16.gmra.mrb[12].mxu1 %v851_v52 }
 0x1d2   :  { %v794_v0 = vpop.f32.mrb[0].mxu1 }
 0x1d3   :  { %v522_v1 = vadd.f32 %v794_v0, %v377_v59  ;;  %v513_v2 = vpop.f32.mrb[1].mxu1 }
 0x1d4   :  { %v514_v4 = vadd.f32 %v513_v2, %v369_v58  ;;  %v795_v5 = vpop.f32.mrb[2].mxu1  ;;  %v852_v2 = vld [vmem:[%s1063_s2 + $0x40] sm:$0xff]  }
 0x1d5   :  { %v525_v6 = vadd.f32 %v795_v5, %v381_v60  ;;  %v516_v7 = vpop.f32.mrb[3].mxu1  ;;  %v578_v10 = vmax.f32 %v522_v1, 0.0  ;;  %v606_v5 = vpop.permute.xlu0 %605 }
 0x1d6   :  { %v517_v8 = vadd.f32 %v516_v7, %v373_v57  ;;  %v576_v9 = vmax.f32 %v514_v4, 0.0 }
 0x1d7   :  { %v579_v11 = vmax.f32 %v525_v6, 0.0 }
 0x1d8   :  { %v577_v13 = vmax.f32 %v517_v8, 0.0 }
 0x1d9   :  { %v593_v14 = vpack.c.bf16 %v579_v11, %v578_v10 }
 0x1da   :  { %v592_v16 = vpack.c.bf16 %v577_v13, %v576_v9  ;;  %v798_v17 = vpop.f32.mrb[4].mxu1 }
 0x1db   :  { %v538_v18 = vadd.f32 %v798_v17, %v393_v63  ;;  %v529_v19 = vpop.f32.mrb[5].mxu1 }
 0x1dc   :  { %v530_v20 = vadd.f32 %v529_v19, %v385_v61  ;;  %v799_v21 = vpop.f32.mrb[6].mxu1  ;;  %809 = vmatpush3.bf16.msra.mxu0 %v592_v16 }
 0x1dd   :  { %v541_v22 = vadd.f32 %v799_v21, %v397_v3  ;;  %v532_v23 = vpop.f32.mrb[7].mxu1  ;;  %810 = vmatprep.subr.bf16.mxu0 %v859_v53  ;;  %v582_v26 = vmax.f32 %v538_v18, 0.0  ;;  %v602_v3 = vpop.permute.xlu1 %601 }
 0x1de   :  { %v533_v25 = vadd.f32 %v532_v23, %v389_v62  ;;  %v580_v29 = vmax.f32 %v530_v20, 0.0 }
 0x1df   :  { %v583_v27 = vmax.f32 %v541_v22, 0.0 }
 0x1e0   :  { %v581_v30 = vmax.f32 %v533_v25, 0.0  ;;  %811 = vmatpush3.bf16.msra.mxu0 %v593_v14 }
 0x1e1   :  { %v595_v31 = vpack.c.bf16 %v583_v27, %v582_v26  ;;  %812 = vmatprep.subr.bf16.mxu0 %v859_v53 }
 0x1e2   :  { %v594_v32 = vpack.c.bf16 %v581_v30, %v580_v29  ;;  %v802_v33 = vpop.f32.mrb[8].mxu1 }
 0x1e3   :  { %v554_v34 = vadd.f32 %v802_v33, %v409_v24  ;;  %v545_v35 = vpop.f32.mrb[9].mxu1 }
 0x1e4   :  { %v546_v37 = vadd.f32 %v545_v35, %v401_v12  ;;  %v803_v38 = vpop.f32.mrb[10].mxu1  ;;  %813 = vmatpush3.bf16.msra.mxu0 %v594_v32  ;;  %v659_v12 = vpop.permute.xlu1 %658 }
 0x1e5   :  { %v557_v39 = vadd.f32 %v803_v38, %v413_v28  ;;  %v548_v40 = vpop.f32.mrb[11].mxu1  ;;  %814 = vmatprep.subr.bf16.mxu0 %v859_v53  ;;  %v586_v43 = vmax.f32 %v554_v34, 0.0 }
 0x1e6   :  { %v549_v42 = vadd.f32 %v548_v40, %v405_v15  ;;  %v584_v45 = vmax.f32 %v546_v37, 0.0 }
 0x1e7   :  { %v587_v44 = vmax.f32 %v557_v39, 0.0 }
 0x1e8   :  { %v585_v46 = vmax.f32 %v549_v42, 0.0  ;;  %815 = vmatpush3.bf16.msra.mxu0 %v595_v31  ;;  %v663_v9 = vpop.permute.xlu1 %662 }
 0x1e9   :  { %v597_v47 = vpack.c.bf16 %v587_v44, %v586_v43  ;;  %816 = vmatprep.subr.bf16.mxu0 %v859_v53 }
 0x1ea   :  { %v596_v49 = vpack.c.bf16 %v585_v46, %v584_v45  ;;  %v806_v50 = vpop.f32.mrb[12].mxu1 }
 0x1eb   :  { %v570_v51 = vadd.f32 %v806_v50, %v425_v48  ;;  %v561_v52 = vpop.f32.mrb[13].mxu1 }
 0x1ec   :  { %v562_v55 = vadd.f32 %v561_v52, %v417_v36  ;;  %v807_v56 = vpop.f32.mrb[14].mxu1  ;;  %817 = vmatpush3.bf16.msra.mxu0 %v596_v49  ;;  %v673_v16 = vpop.permute.xlu1 %672 }
 0x1ed   :  { %v573_v57 = vadd.f32 %v807_v56, %v429_v54  ;;  %v564_v58 = vpop.f32.mrb[15].mxu1  ;;  %818 = vmatprep.subr.bf16.mxu0 %v859_v53  ;;  %v590_v60 = vmax.f32 %v570_v51, 0.0 }
 0x1ee   :  { %v565_v59 = vadd.f32 %v564_v58, %v421_v41  ;;  %v588_v62 = vmax.f32 %v562_v55, 0.0 }
 0x1ef   :  { %v591_v61 = vmax.f32 %v573_v57, 0.0 }
 0x1f0   :  { %v589_v63 = vmax.f32 %v565_v59, 0.0  ;;  %819 = vmatpush3.bf16.msra.mxu0 %v597_v47 }
 0x1f1   :  { %v599_v0 = vpack.c.bf16 %v591_v61, %v590_v60  ;;  %820 = vmatprep.subr.bf16.mxu0 %v859_v53 }
 0x1f2   :  { %v598_v1 = vpack.c.bf16 %v589_v63, %v588_v62 }
 0x1f4   :  { %821 = vmatpush3.bf16.msra.mxu0 %v598_v1 }
 0x1f5   :  { %822 = vmatprep.subr.bf16.mxu0 %v859_v53  ;;  %v669_v53 = vpop.permute.xlu0 %668 }
 0x1f8   :  { %823 = vmatpush3.bf16.msra.mxu0 %v599_v0 }
 0x1fb   :  { %825 = vmatmul.mubr.bf16.vlgmr.msra.gmra.mrb[16].mxu0 %v852_v2 }
 0x2ce   :  { %v648_v4 = vpop.f32.mrb[16].mxu0 }
 0x2cf   :  { %v649_v6 = vadd.f32 %v648_v4, %v602_v3  ;;  %v826_v7 = vpop.f32.mrb[17].mxu0 }
 0x2d0   :  { %v651_v8 = vpop.f32.mrb[18].mxu0 }
 0x2d1   :  { %853 = vtanh.f32 %v649_v6  ;;  %v652_v10 = vadd.f32 %v651_v8, %v606_v5  ;;  %v827_v11 = vpop.f32.mrb[19].mxu0 }
 0x2d3   :  { %855 = vtanh.f32 %v652_v10 }
 0x2db   :  { %v854_v13 = vpop.eup %853 }
 0x2dc   :  { %v665_v14 = vmul.f32 %v854_v13, %v659_v12 }
 0x2dd   :  { %v856_v15 = vpop.eup %855 }
 0x2de   :  { %v666_v17 = vmul.f32 %v856_v15, %v663_v9  ;;  %v675_v18 = vadd.f32 %v669_v53, %v665_v14 }
 0x2e0   :  { %677 = vst [vmem:[%s1064_s4] sm:$0xff] %v675_v18  ;;  %v676_v19 = vadd.f32 %v673_v16, %v666_v17 }
 0x2e2   :  { %678 = vst [vmem:[%s1064_s4 + $0x8] sm:$0xff] %v676_v19 }

</bundles_post_ra>
